<compile_context>
chip_gen: v5e
topology: v5e:2x2
jax: 0.10.0
libtpu: 0.0.40
codegen_flags: <defaults>
</compile_context>

<pallas_src>
import jax
import jax.numpy as jnp
from jax.experimental import pallas as pl
from jax.experimental.pallas import tpu as pltpu


def _patch_proj_kernel(x_ref, w_ref, b_ref, o_ref):
    # One (TM, K) x (K, E) matmul tile on the MXU with f32 accumulation,
    # f32 bias add, then a single cast to the output dtype.
    acc = jnp.dot(x_ref[...], w_ref[...], preferred_element_type=jnp.float32)
    o_ref[...] = (acc + b_ref[...]).astype(o_ref.dtype)


def _round_up(v, m):
    return ((v + m - 1) // m) * m


def _choose_tm(M, K, E, in_itemsize, out_itemsize):
    """Pick the M tile size.

    Two constraints:
      * VMEM: double-buffered X + out tiles fit in a ~16 MiB budget (accounts
        for the last dim padding to 128 lanes in VMEM; K=48 -> 128).
      * Parallelism: at least 4 tiles so v7x's two TensorCores each get >= 2
        tiles (grid axis is "parallel") and double-buffering overlaps.
    """
    k_pad = _round_up(K, 128)
    e_pad = _round_up(E, 128)
    per_row = 2 * (k_pad * in_itemsize + e_pad * out_itemsize)  # double-buffered
    budget = 16 * 1024 * 1024
    tm_budget = max(8, ((budget // per_row) // 8) * 8)
    tm_tiles = max(8, _round_up(pl.cdiv(M, 4), 8))   # >= 4 tiles when possible
    tm = min(tm_budget, tm_tiles)
    if tm >= M:
        return M          # full extent is always a legal block shape
    return int(tm)        # multiple of 8; partial last block handled by Pallas


def patch_proj_pallas(x_patches, w, b, out_dtype, tm=None):
    """x_patches: (M, K), w: (K, E), b: (1, E) f32 -> (M, E) out_dtype."""
    M, K = x_patches.shape
    K2, E = w.shape
    assert K2 == K
    in_itemsize = jnp.dtype(x_patches.dtype).itemsize
    out_itemsize = jnp.dtype(out_dtype).itemsize
    TM = _choose_tm(M, K, E, in_itemsize, out_itemsize) if tm is None else tm

    grid = (pl.cdiv(M, TM),)
    cost = pl.CostEstimate(
        flops=2 * M * K * E,
        transcendentals=0,
        bytes_accessed=int(M * K * in_itemsize
                           + K * E * jnp.dtype(w.dtype).itemsize
                           + E * 4
                           + M * E * out_itemsize),
    )

    return pl.pallas_call(
        _patch_proj_kernel,
        out_shape=jax.ShapeDtypeStruct((M, E), out_dtype),
        grid=grid,
        in_specs=[
            # X tiles stream over M (double-buffered by the pipeline).
            pl.BlockSpec((TM, K), lambda i: (i, 0),
                         memory_space=pltpu.MemorySpace.VMEM),
            # Weight and bias stay resident in VMEM (constant block index).
            pl.BlockSpec((K, E), lambda i: (0, 0),
                         memory_space=pltpu.MemorySpace.VMEM),
            pl.BlockSpec((1, E), lambda i: (0, 0),
                         memory_space=pltpu.MemorySpace.VMEM),
        ],
        out_specs=pl.BlockSpec((TM, E), lambda i: (i, 0),
                               memory_space=pltpu.MemorySpace.VMEM),
        compiler_params=pltpu.CompilerParams(
            dimension_semantics=("parallel",),     # shard M tiles across TCs (v7x)
            vmem_limit_bytes=32 * 1024 * 1024,     # covers v5e's 16 MiB scoped default
        ),
        cost_estimate=cost,
    )(x_patches, w, b)


def patch_embed_forward(x, conv_weight, conv_bias, patch_size, inner_patches,
                        compute_dtype=None, out_dtype=None, tm=None):
    """Reproduces PatchEmbed.forward (norm_layer=None).

    x:           (B, C, H, W)   NCHW (PyTorch convention)
    conv_weight: (E, C, kh, kw) PyTorch Conv2d weight
    conv_bias:   (E,)
    compute_dtype: optional dtype (e.g. jnp.bfloat16) for the X/W operands;
                   accumulation and bias add stay f32.
    out_dtype:   output dtype (defaults to x.dtype; set bf16 if downstream
                 accepts bf16 activations — halves output HBM writes).
    returns:     (B, num_patches, inner_patches, inner_patches, E)
    """
    B, C, H, W = x.shape
    E, _, kh, kw = conv_weight.shape            # kh == kw == patch_size // inner_patches
    inner = inner_patches
    Hp, Wp = H // patch_size, W // patch_size   # patches_resolution
    num_patches = Hp * Wp
    assert H % patch_size == 0 and W % patch_size == 0
    assert kh == patch_size // inner and kw == patch_size // inner

    if out_dtype is None:
        out_dtype = x.dtype

    # Cast BEFORE the patchify so the transpose pass moves compute_dtype bytes
    # (XLA fuses the convert into the transpose -> one pass instead of two).
    if compute_dtype is not None:
        x = x.astype(compute_dtype)
        conv_weight = conv_weight.astype(compute_dtype)

    # --- glue: im2col with rows pre-ordered (b, hp, wp, ih, iw) -------------
    # h = hp*patch + ih*kh + dh,  w = wp*patch + iw*kw + dw
    x8 = x.reshape(B, C, Hp, inner, kh, Wp, inner, kw)
    xp = jnp.transpose(x8, (0, 2, 5, 3, 6, 1, 4, 7))      # (B,Hp,Wp,ih,iw,C,kh,kw)
    xp = xp.reshape(B * num_patches * inner * inner, C * kh * kw)   # (M, K)

    w_mat = conv_weight.reshape(E, C * kh * kw).T          # (K, E), K = (c, dh, dw)
    b_mat = conv_bias.reshape(1, E).astype(jnp.float32)    # bias add in f32

    # --- hot path: tiled matmul + bias in Pallas ----------------------------
    y = patch_proj_pallas(xp, w_mat, b_mat, out_dtype=out_dtype, tm=tm)  # (M, E)

    # Because rows were pre-ordered (b, hp, wp, ih, iw), the PyTorch output is
    # just a leading-dim split of y: free (no transpose, no extra HBM pass).
    return y.reshape(B, num_patches, inner, inner, E)
    # norm_layer is None in this configuration -> no norm applied.


def _reference_forward(x, conv_weight, conv_bias, patch_size, inner_patches):
    """Pure-JAX reference using lax.conv (matches PyTorch semantics)."""
    B, C, H, W = x.shape
    E, _, kh, kw = conv_weight.shape
    Hp, Wp = H // patch_size, W // patch_size
    num_patches = Hp * Wp
    y = jax.lax.conv_general_dilated(
        x, conv_weight, window_strides=(kh, kw), padding="VALID",
        dimension_numbers=("NCHW", "OIHW", "NCHW"),
    ) + conv_bias.reshape(1, E, 1, 1)
    y = y.reshape(B, E, Hp, inner_patches, Wp, inner_patches)
    y = jnp.transpose(y, (0, 2, 4, 3, 5, 1))
    return y.reshape(B, num_patches, inner_patches, inner_patches, E)


if __name__ == "__main__":
    # Small, self-consistent configuration.  embed_dim is a multiple of 128 so
    # the kernel's output stores are lane-dense (no masked vst).
    patch_size = 16
    inner_patches = 4
    conv_size = patch_size // inner_patches   # 4
    in_chans = 3
    embed_dim = 128
    B, H, W = 2, 32, 32                       # H, W divisible by patch_size

    key = jax.random.PRNGKey(0)
    k_x, k_w, k_b = jax.random.split(key, 3)
    x = jax.random.normal(k_x, (B, in_chans, H, W), dtype=jnp.float32)
    # Deterministic "Conv2d" parameters (shapes from
    # nn.Conv2d(in_chans, embed_dim, conv_size, conv_size)).
    conv_weight = 0.02 * jax.random.normal(
        k_w, (embed_dim, in_chans, conv_size, conv_size), dtype=jnp.float32)
    conv_bias = 0.01 * jax.random.normal(k_b, (embed_dim,), dtype=jnp.float32)

    ref = _reference_forward(x, conv_weight, conv_bias, patch_size, inner_patches)
    expected_shape = (B, (H // patch_size) * (W // patch_size),
                      inner_patches, inner_patches, embed_dim)

    # 1) Default path: f32 operands/output, auto-chosen tile size (>= 4 tiles).
    out = patch_embed_forward(x, conv_weight, conv_bias, patch_size, inner_patches)
    out = jax.block_until_ready(out)
    assert out.shape == expected_shape, out.shape
    assert jnp.allclose(out, ref, atol=1e-4, rtol=1e-4), "f32 mismatch vs reference"

    # 2) Forced odd tile size so the last M block is partial (exercises the
    #    pipeline's OOB clipping on a multi-tile grid).
    out_tiled = patch_embed_forward(x, conv_weight, conv_bias, patch_size,
                                    inner_patches, tm=48)
    out_tiled = jax.block_until_ready(out_tiled)
    assert jnp.allclose(out_tiled, ref, atol=1e-4, rtol=1e-4), "tiled mismatch"

    # 3) Production-style config: bf16 operands (cast before the patchify) and
    #    bf16 output; f32 accumulate + f32 bias add inside the kernel.
    out_bf16 = patch_embed_forward(x, conv_weight, conv_bias, patch_size,
                                   inner_patches, compute_dtype=jnp.bfloat16,
                                   out_dtype=jnp.bfloat16)
    out_bf16 = jax.block_until_ready(out_bf16)
    assert out_bf16.dtype == jnp.bfloat16
    assert jnp.allclose(out_bf16.astype(jnp.float32), ref,
                        atol=5e-2, rtol=5e-2), "bf16 mismatch"

    print("KERNEL_OK")
</pallas_src>

<mosaic_0001>
module attributes {stable_mosaic.version = 11 : i64} {
  func.func @_patch_proj_kernel(%arg0: i32, %arg1: memref<32x48xf32, #tpu.memory_space<vmem>>, %arg2: memref<48x128xf32, #tpu.memory_space<vmem>>, %arg3: memref<1x128xf32, #tpu.memory_space<vmem>>, %arg4: memref<32x128xf32, #tpu.memory_space<vmem>>) attributes {dimension_semantics = [#tpu.dimension_semantics<parallel>], iteration_bounds = array<i64: 4>, scalar_prefetch = 0 : i64, scratch_operands = 0 : i64, tpu.core_type = #tpu.core_type<tc>, window_params = [{transform_indices = @transform_0, window_bounds = array<i64: 32, 48>}, {pipeline_mode = #tpu.pipeline_mode<synchronous>, transform_indices = @transform_1, window_bounds = array<i64: 48, 128>}, {pipeline_mode = #tpu.pipeline_mode<synchronous>, transform_indices = @transform_2, window_bounds = array<i64: 1, 128>}, {transform_indices = @transform_3, window_bounds = array<i64: 32, 128>}]} {
    %c0 = arith.constant 0 : index
    %c0_0 = arith.constant 0 : index
    %0 = vector.load %arg1[%c0, %c0_0] : memref<32x48xf32, #tpu.memory_space<vmem>>, vector<32x48xf32>
    %c0_1 = arith.constant 0 : index
    %c0_2 = arith.constant 0 : index
    %1 = vector.load %arg2[%c0_1, %c0_2] : memref<48x128xf32, #tpu.memory_space<vmem>>, vector<48x128xf32>
    %cst = arith.constant dense<0.000000e+00> : vector<32x128xf32>
    %2 = tpu.matmul %0, %1, %cst {dimension_numbers = #tpu.dot_dimension_numbers<[1], [0], [0], [1], [0, 0, 1, 1], [], []>} : vector<32x48xf32>, vector<48x128xf32>, vector<32x128xf32> -> vector<32x128xf32>
    %c0_3 = arith.constant 0 : index
    %c0_4 = arith.constant 0 : index
    %3 = vector.load %arg3[%c0_3, %c0_4] : memref<1x128xf32, #tpu.memory_space<vmem>>, vector<1x128xf32>
    %4 = vector.broadcast %3 : vector<1x128xf32> to vector<32x128xf32>
    %5 = arith.addf %2, %4 : vector<32x128xf32>
    %c0_5 = arith.constant 0 : index
    %c0_6 = arith.constant 0 : index
    %6 = vector.load %arg4[%c0_5, %c0_6] : memref<32x128xf32, #tpu.memory_space<vmem>>, vector<32x128xf32>
    tpu.vector_store %arg4[%c0_5, %c0_6], %5 {strides = array<i32>} : memref<32x128xf32, #tpu.memory_space<vmem>>, vector<32x128xf32>,
    return
  }
  func.func @transform_0(%arg0: i32) -> (i32, i32) {
    %c0_i32 = arith.constant 0 : i32
    %c0_i32_0 = arith.constant 0 : i32
    return %arg0, %c0_i32 : i32, i32
  }
  func.func @transform_1(%arg0: i32) -> (i32, i32) {
    %c0_i32 = arith.constant 0 : i32
    %c0_i32_0 = arith.constant 0 : i32
    %c0_i32_1 = arith.constant 0 : i32
    return %c0_i32, %c0_i32_0 : i32, i32
  }
  func.func @transform_2(%arg0: i32) -> (i32, i32) {
    %c0_i32 = arith.constant 0 : i32
    %c0_i32_0 = arith.constant 0 : i32
    %c0_i32_1 = arith.constant 0 : i32
    return %c0_i32, %c0_i32_0 : i32, i32
  }
  func.func @transform_3(%arg0: i32) -> (i32, i32) {
    %c0_i32 = arith.constant 0 : i32
    %c0_i32_0 = arith.constant 0 : i32
    return %arg0, %c0_i32 : i32, i32
  }
}

</mosaic_0001>

<bundles_post_ra>
// kernel: tpu_custom_call.1
= control target key start
LH: loop header
LB: loop body
LE: loop exit
PB: predicated region body
PF: predicated region fallthrough
CT: control target
= control target key end

     0   :  { %8 = vsyncpa [#allocation3], 0  ;;  %s578_s0 = inlined_call_operand.vmem [shape: f32[128,48], index: 0, kind: input, shape index: {}]   ;;  %s579_s1 = inlined_call_operand.vmem [shape: f32[48,128], index: 1, kind: input, shape index: {}]   ;;  %s580_s2 = inlined_call_operand.vmem [shape: f32[1,128], index: 2, kind: input, shape index: {}]   ;;  %s581_s3 = inlined_call_operand.hbm [shape: f32[128,128], index: 3, kind: output, shape index: {}]  }
   0x1   :  { %10 = vsyncpa [#allocation3 + $0x1], 0  ;;  %s473_s12 = smov 0   ;;  %s475_s13 = smov 0  }
   0x2   :  { %s477_s14 = smov 0   ;;  %s479_s15 = smov 0  }
   0x3 LB: > { %s494_s16 = sadd.s32 4294967295, %s449_s15   ;;  %s310_s17 = sadd.s32 4294967294, %s449_s15   ;;  %s449_s15 = sphi %s479_s15, %s587_s15   ;;  %s445_s14 = sphi %s477_s14, %s586_s14   ;;  %s441_s13 = sphi %s475_s13, %s585_s13   ;;  %s437_s12 = sphi %s473_s12, %s584_s12  }
   0x4   : > { %s498_s18 = sadd.s32 1, %s449_s15   ;;  %s91_s19 = sadd.s32 1, %s445_s14 }
   0x5   : > { %s88_s20 = ssub.s32 %s449_s15, %s498_s18  ;;  %p101_p0 = scmp.ne.s32.totalorder %s445_s14, %s441_s13 }
   0x6   : > { %p89_p1 = scmp.eq.s32.totalorder %s88_s20, 0  ;;  %p102_p2 = scmp.eq.s32.totalorder %s494_s16, 3 }
   0x7   : > { %p107_p3 = scmp.ne.s32.totalorder %s441_s13, %s437_s12  ;;  %p108_p4 = scmp.eq.s32.totalorder %s310_s17, 3 }
   0x8   : > { %s509_s21 = scalar_select %p89_p1, %s445_s14, %s91_s19  }
   0x9   : > { %p511_p5 = por %p102_p2, %p101_p0  ;;  %p515_p6 = por %p108_p4, %p107_p3 }
   0xa   : > { %p313_p7 = scmp.ge.s32.totalorder %s449_s15, 1  ;;  %p141_p8 = scmp.lt.s32.totalorder %s449_s15, 5 }
   0xc   : > { %p142_p9 = pnand %p313_p7, %p141_p8 }
   0xd   : > { %s315_s28 = sshll.u32 (!%p142_p9), %s494_s16, 2  ;;  %s162_s20 = sand.u32 (!%p142_p9), 1, %s441_s13  }
   0xe   : > { %145 = sbr.rel (%p142_p9) target bundleno = 170 (0xaa), region = 32  ;;  %p166_p10 = scmp.lt.s32.totalorder (!%p142_p9), %s315_s28, 15 }
   0xf   : > { %s314_s24 = sshll.u32 (!%p142_p9), %s162_s20, 5  ;;  %s326_s25 = sshll.u32 (!%p142_p9), %s494_s16, 5 }
  0x10   : > { %s244_s30 = scalar_lea.hbm (!%p142_p9), %s581_s3, %s326_s25  ;;  %s164_s4 = scalar_lea.vmem (!%p142_p9), [#allocation2], %s314_s24 }
  0x11   : > { %s245_s5 = sshll.u32 (!%p142_p9), %s164_s4, 4  ;;  %s233_s16 = scalar_lea.sflag (!%p142_p9), [#allocation3], %s162_s20  ;;  %s246_s5 = int_to_ptr.vmem [resolvable:$true] %s245_s5 }
  0x13   : > { %v181_v0 = vld [vmem:[%s579_s1 + $0x28] sm:$0xff]  ;;  %v180_v1 = vld [vmem:[%s579_s1 + $0x20] sm:$0xff]  ;;  %v179_v2 = vld [vmem:[%s579_s1 + $0x18] sm:$0xff]  ;;  %s589_s28 = smov (!%p166_p10, %s315_s28), 15  ;;  %vm186_vm0 = vcmask 392192  }
  0x14   : > { %328 = vmatpush.msra.mxu2 %v181_v0  ;;  %329 = vmatpush.msra.mxu3 %v181_v0  ;;  %v178_v3 = vld [vmem:[%s579_s1 + $0x10] sm:$0xff]  ;;  %s316_s6 = sshll.u32 %s589_s28, 3  ;;  %v177_v4 = vld [vmem:[%s579_s1 + $0x8] sm:$0xff]  ;;  %v176_v5 = vld [vmem:[%s579_s1] sm:$0xff] }
  0x15   : > { %209 = vmatpush.msra.mxu0 %v181_v0  ;;  %327 = vmatpush.msra.mxu1 %v181_v0  ;;  %s169_s11 = scalar_lea.vmem %s578_s0, %s316_s6  ;;  %v386_v10 = vld [vmem:[%s580_s2] ss:$0 sm:$0xff]  ;;  %s247_s6 = sshll.u32 %s244_s30, 4  ;;  %s248_s6 = int_to_ptr.hbm [resolvable:$true] %s247_s6 }
  0x16   : > { %331 = vmatpush.msra.mxu2 %v180_v1  ;;  %332 = vmatpush.msra.mxu3 %v180_v1  ;;  %v174_v6 = vld [vmem:[%s169_s11 + $0x10] sm:$0xff]  ;;  %v175_v7 = vld [vmem:[%s169_s11 + $0x18] sm:$0xff]  ;;  %v172_v8 = vld [vmem:[%s169_s11] sm:$0xff]  ;;  %s401_s7 = sshra.s32 %s248_s6, 4  ;;  %s402_s7 = int_to_ptr.hbm [resolvable:$true] %s401_s7 }
  0x17   : > { %210 = vmatpush.msra.mxu0 %v180_v1  ;;  %330 = vmatpush.msra.mxu1 %v180_v1  ;;  %v173_v9 = vld [vmem:[%s169_s11 + $0x8] sm:$0xff]  ;;  %s403_s8 = scalar_lea.hbm %s402_s7, 32  ;;  %s407_s11 = scalar_lea.hbm %s581_s3, 128 }
  0x18   : > { %334 = vmatpush.msra.mxu2 %v179_v2  ;;  %335 = vmatpush.msra.mxu3 %v179_v2  ;;  %p404_p11 = scmp.ne.s32.totalorder %s402_s7, %s403_s8  ;;  %p408_p0 = scmp.lt.s32.totalorder %s402_s7, %s581_s3 }
  0x19   : > { %211 = vmatpush.msra.mxu0 %v179_v2  ;;  %333 = vmatpush.msra.mxu1 %v179_v2  ;;  %p409_p1 = scmp.lt.s32.totalorder %s407_s11, %s403_s8 }
  0x1a   : > { %337 = vmatpush.msra.mxu2 %v178_v3  ;;  %338 = vmatpush.msra.mxu3 %v178_v3  ;;  %p405_p12 = pnand %p404_p11, %p511_p5 }
  0x1b   : > { %212 = vmatpush.msra.mxu0 %v178_v3  ;;  %336 = vmatpush.msra.mxu1 %v178_v3  ;;  %p410_p2 = por %p409_p1, %p408_p0 }
  0x1c   : > { %340 = vmatpush.msra.mxu2 %v177_v4  ;;  %341 = vmatpush.msra.mxu3 %v177_v4  ;;  %p406_p13 = pneg %p405_p12 }
  0x1d   : > { %213 = vmatpush.msra.mxu0 %v177_v4  ;;  %339 = vmatpush.msra.mxu1 %v177_v4 }
  0x1e   : > { %343 = vmatpush.msra.mxu2 %v176_v5  ;;  %344 = vmatpush.msra.mxu3 %v176_v5  ;;  %p411_p3 = pnand %p410_p2, %p406_p13 }
  0x1f   : > { %319 = vmatmul.msk.f32.vlgmr.msra.gmra.mxu2 %vm186_vm0, %v174_v6  ;;  %320 = vmatmul.msk.f32.vlgmr.msra.gmra.mxu3 %vm186_vm0, %v175_v7 }
  0x20   : > { %214 = vmatpush.msra.mxu0 %v176_v5  ;;  %342 = vmatpush.msra.mxu1 %v176_v5 }
  0x21   : > { %317 = vmatmul.msk.f32.vlgmr.msra.gmra.mxu0 %vm186_vm0, %v172_v8  ;;  %318 = vmatmul.msk.f32.vlgmr.msra.gmra.mxu1 %vm186_vm0, %v173_v9 }
  0x9e   : > { %v216_v11 = vpop.f32.mrf.mxu0  ;;  %v219_v12 = vpop.f32.mrf.mxu1 }
  0x9f   : > { %v217_v13 = vadd.f32 %v386_v10, %v216_v11  ;;  %v220_v14 = vadd.f32 %v386_v10, %v219_v12 }
  0xa1   : > { %228 = vst [vmem:[%s164_s4] sm:$0xff] %v217_v13 }
  0xa2   : > { %229 = vst [vmem:[%s164_s4 + $0x8] sm:$0xff] %v220_v14  ;;  %v222_v15 = vpop.f32.mrf.mxu2  ;;  %v225_v16 = vpop.f32.mrf.mxu3 }
  0xa3   : > { %v223_v17 = vadd.f32 %v386_v10, %v222_v15  ;;  %v226_v18 = vadd.f32 %v386_v10, %v225_v16 }
  0xa5   : > { %230 = vst [vmem:[%s164_s4 + $0x10] sm:$0xff] %v223_v17 }
  0xa6   : > { %231 = vst [vmem:[%s164_s4 + $0x18] sm:$0xff] %v226_v18 }
  0xa7   : > { %414 = shalt.err (!%p411_p3)
}
  0xa8   : > { %s451_s20 = smov 128   ;;  %s452_s24 = smov 8  }
  0xa9   : > { %345 = dma.vmem_to_hbm [thread:$0]  (%p511_p5), %s246_s5, 512, %s248_s6, %s233_s16, %s451_s20, %s451_s20, %s452_s24  }
  0xaa PF: > { %p351_p4 = scmp.ge.s32.totalorder %s449_s15, 2  ;;  %s262_s25 = sand.u32 1, %s437_s12  }
  0xab   : > { %s263_s26 = scalar_lea.sflag [#allocation3], %s262_s25 }
  0xac   : > { %p348_p7 = pnand %p351_p4, %p515_p6 }
  0xae   : > { %p349_p8 = pneg %p348_p7 }
  0xb0   : > { %432 = dma.done.wait (%p349_p8), %s263_s26, 512  }
  0xb1   : > { %434 = vsyncadd (%p349_p8), %s263_s26, 4294966784  ;;  %p13_p9 = scmp.ge.s32.totalorder %s498_s18, 6   ;;  %s584_s12 = smov %s441_s13 }
  0xb2   : > { %s585_s13 = smov %s445_s14  ;;  %s586_s14 = smov %s509_s21 }
  0xb3   : > { %s587_s15 = smov %s498_s18  ;;  %15 = sbr.rel (!%p13_p9) target bundleno = 3 (0x3), region = 67 }
  0xb8   :  { %269 = vsyncpa [#allocation3], 1 }
  0xb9   :  { %271 = vsyncpa [#allocation3 + $0x1], 1 }

</bundles_post_ra>
